<compile_context>
chip_gen: v7x
topology: tpu7x:2x2x1
jax: 0.10.0
libtpu: 0.0.40
codegen_flags: <defaults>
</compile_context>

<pallas_src>
import functools

import jax
import jax.numpy as jnp
from jax.experimental import pallas as pl
from jax.experimental.pallas import tpu as pltpu


def mlp_kernel(x_ref, w1_ref, b1_ref, w2_ref, b2_ref, w3_ref, b3_ref, o_ref):
    # Cast the f32 input tile to bf16 in-kernel (VPU has slack; avoids a separate
    # wrapper-side pad/cast pass over x in HBM).
    x = x_ref[...].astype(jnp.bfloat16)

    # Layer 1: Linear(input_dim, 512) + ReLU (bf16 MXU operands, f32 accumulate).
    h1 = jnp.dot(x, w1_ref[...], preferred_element_type=jnp.float32)
    h1 = jnp.maximum(h1 + b1_ref[...], 0.0).astype(jnp.bfloat16)  # fused bias+ReLU+downcast
    # (Dropout(0.5) -> identity in eval mode)

    # Layer 2: Linear(512, 256) + ReLU.
    h2 = jnp.dot(h1, w2_ref[...], preferred_element_type=jnp.float32)
    h2 = jnp.maximum(h2 + b2_ref[...], 0.0).astype(jnp.bfloat16)
    # (Dropout(0.5) -> identity in eval mode)

    # Layer 3: Linear(256, num_classes_padded).
    out = jnp.dot(h2, w3_ref[...], preferred_element_type=jnp.float32) + b3_ref[...]
    o_ref[...] = out.astype(o_ref.dtype)


def _round_up(n, m):
    return ((n + m - 1) // m) * m


def _choose_batch_tiling(B, batch_tile):
    """Pick (Bp, tile_b, n_tiles): 8-aligned tile that divides the batch tightly,
    capped at batch_tile, with >=2 grid steps when there is enough work (v7x)."""
    Bp = _round_up(B, 8)
    n_tiles = pl.cdiv(Bp, batch_tile)
    if Bp >= 16:                      # at least two 8-row tiles of work exist
        n_tiles = max(n_tiles, 2)     # let v7x's 2 TensorCores both get steps
    tile_b = _round_up(pl.cdiv(Bp, n_tiles), 8)
    n_tiles = pl.cdiv(Bp, tile_b)
    Bp = tile_b * n_tiles
    return Bp, tile_b, n_tiles


def prepare_mlp_params(w1, b1, w2, b2, w3, b3):
    """One-time weight prep (hoisted out of the per-call path).

    Weights are (in, out) (transposed vs. PyTorch).  W3/b3 are zero-padded along
    the class dim to a multiple of 128 so the output store is lane-dense.
    Returns (params_dict, num_classes).
    """
    hidden2, num_classes = w3.shape
    Cp = _round_up(num_classes, 128)
    params = dict(
        w1=w1.astype(jnp.bfloat16),
        b1=b1.astype(jnp.float32).reshape(1, -1),
        w2=w2.astype(jnp.bfloat16),
        b2=b2.astype(jnp.float32).reshape(1, -1),
        w3=jnp.zeros((hidden2, Cp), jnp.bfloat16).at[:, :num_classes].set(
            w3.astype(jnp.bfloat16)),
        b3=jnp.zeros((1, Cp), jnp.float32).at[:, :num_classes].set(
            b3.astype(jnp.float32).reshape(1, -1)),
    )
    return params, num_classes


@functools.partial(jax.jit, static_argnames=("num_classes", "batch_tile"))
def mlp_forward(x, params, *, num_classes, batch_tile=512):
    """x: (B, input_dim) f32.  params from prepare_mlp_params().  Returns (B, num_classes) bf16."""
    B, input_dim = x.shape
    hidden1 = params["w1"].shape[1]
    hidden2 = params["w2"].shape[1]
    Cp = params["w3"].shape[1]

    Bp, tile_b, n_tiles = _choose_batch_tiling(B, batch_tile)

    # Only the batch dim is (lightly) padded, and only when needed; x keeps its
    # original dtype/feature dim (the kernel casts to bf16 itself).
    if Bp != B:
        x = jnp.zeros((Bp, input_dim), x.dtype).at[:B].set(x)

    grid = (n_tiles,)

    # Weights/biases: full-array, resident in VMEM (loaded once, not tiled/double-buffered).
    weight_spec = pl.BlockSpec(memory_space=pltpu.MemorySpace.VMEM)

    weight_bytes = (
        (params["w1"].size + params["w2"].size + params["w3"].size) * 2
        + (params["b1"].size + params["b2"].size + params["b3"].size) * 4)
    flops = 2 * Bp * (input_dim * hidden1 + hidden1 * hidden2 + hidden2 * Cp)
    bytes_accessed = Bp * input_dim * 4 + Bp * Cp * 2 + weight_bytes
    cost = pl.CostEstimate(flops=flops, transcendentals=0,
                           bytes_accessed=bytes_accessed)

    # Per-step VMEM estimate: double-buffered x/out tiles + f32 intermediates + weights.
    vmem_est = (2 * tile_b * input_dim * 4
                + 2 * tile_b * Cp * 2
                + tile_b * (hidden1 + hidden2) * 4
                + weight_bytes)
    compiler_kwargs = dict(dimension_semantics=("parallel",))
    if vmem_est > 12 * 1024 * 1024:   # v5e default scoped-VMEM headroom (16 MiB)
        compiler_kwargs["vmem_limit_bytes"] = min(2 * vmem_est, 100 * 1024 * 1024)

    out_padded = pl.pallas_call(
        mlp_kernel,
        out_shape=jax.ShapeDtypeStruct((Bp, Cp), jnp.bfloat16),  # bf16 halves writeback
        grid_spec=pltpu.PrefetchScalarGridSpec(
            num_scalar_prefetch=0,
            grid=grid,
            in_specs=[
                pl.BlockSpec((tile_b, input_dim), lambda i: (i, 0)),  # x tile (f32)
                weight_spec,  # W1
                weight_spec,  # b1
                weight_spec,  # W2
                weight_spec,  # b2
                weight_spec,  # W3
                weight_spec,  # b3
            ],
            out_specs=pl.BlockSpec((tile_b, Cp), lambda i: (i, 0)),
        ),
        compiler_params=pltpu.CompilerParams(**compiler_kwargs),
        cost_estimate=cost,
    )(x, params["w1"], params["b1"], params["w2"], params["b2"],
      params["w3"], params["b3"])

    # Slice fuses into this jitted program; in production, fuse into the consumer.
    return out_padded[:B, :num_classes]


def mlp_reference(x, w1, b1, w2, b2, w3, b3):
    """Plain-JAX reference mirroring the kernel's bf16-operand / f32-accum math."""
    xb = x.astype(jnp.bfloat16)
    h1 = jnp.maximum(
        jnp.dot(xb, w1.astype(jnp.bfloat16), preferred_element_type=jnp.float32)
        + b1.astype(jnp.float32), 0.0)
    h2 = jnp.maximum(
        jnp.dot(h1.astype(jnp.bfloat16), w2.astype(jnp.bfloat16),
                preferred_element_type=jnp.float32)
        + b2.astype(jnp.float32), 0.0)
    return (jnp.dot(h2.astype(jnp.bfloat16), w3.astype(jnp.bfloat16),
                    preferred_element_type=jnp.float32)
            + b3.astype(jnp.float32))


def init_linear_params(key, in_features, out_features, dtype=jnp.float32):
    """PyTorch-nn.Linear-style uniform init. W is (in, out) (transposed vs. torch)."""
    k_w, k_b = jax.random.split(key)
    bound = 1.0 / float(in_features) ** 0.5
    w = jax.random.uniform(k_w, (in_features, out_features), dtype=dtype,
                           minval=-bound, maxval=bound)
    b = jax.random.uniform(k_b, (1, out_features), dtype=dtype,
                           minval=-bound, maxval=bound)
    return w, b


if __name__ == "__main__":
    # Small, module-consistent shapes: x is (batch, input_dim) features.
    batch = 16
    input_dim = 32
    num_classes = 10
    hidden1, hidden2 = 512, 256

    key = jax.random.PRNGKey(0)
    kx, k1, k2, k3 = jax.random.split(key, 4)

    x = jax.random.normal(kx, (batch, input_dim), dtype=jnp.float32)
    w1, b1 = init_linear_params(k1, input_dim, hidden1)
    w2, b2 = init_linear_params(k2, hidden1, hidden2)
    w3, b3 = init_linear_params(k3, hidden2, num_classes)

    # One-time weight prep (padding/casting hoisted out of the forward path).
    params, nc = prepare_mlp_params(w1, b1, w2, b2, w3, b3)

    out = mlp_forward(x, params, num_classes=nc)
    out = jax.block_until_ready(out)

    ref = mlp_reference(x, w1, b1, w2, b2, w3, b3)
    assert out.shape == (batch, num_classes)
    err = float(jnp.max(jnp.abs(out.astype(jnp.float32) - ref)))
    assert jnp.allclose(out.astype(jnp.float32), ref, atol=3e-2, rtol=3e-2), err

    print("KERNEL_OK")
</pallas_src>

<mosaic_0001>
module attributes {stable_mosaic.version = 11 : i64} {
  func.func @mlp_kernel(%arg0: i32, %arg1: memref<8x32xf32, #tpu.memory_space<vmem>>, %arg2: memref<32x512xbf16, #tpu.memory_space<vmem>>, %arg3: memref<1x512xf32, #tpu.memory_space<vmem>>, %arg4: memref<512x256xbf16, #tpu.memory_space<vmem>>, %arg5: memref<1x256xf32, #tpu.memory_space<vmem>>, %arg6: memref<256x128xbf16, #tpu.memory_space<vmem>>, %arg7: memref<1x128xf32, #tpu.memory_space<vmem>>, %arg8: memref<8x128xbf16, #tpu.memory_space<vmem>>) attributes {dimension_semantics = [#tpu.dimension_semantics<parallel>], iteration_bounds = array<i64: 2>, scalar_prefetch = 0 : i64, scratch_operands = 0 : i64, tpu.core_type = #tpu.core_type<tc>, window_params = [{transform_indices = @transform_0, window_bounds = array<i64: 8, 32>}, {pipeline_mode = #tpu.pipeline_mode<synchronous>, transform_indices = @transform_1, window_bounds = array<i64: 32, 512>}, {pipeline_mode = #tpu.pipeline_mode<synchronous>, transform_indices = @transform_2, window_bounds = array<i64: 1, 512>}, {pipeline_mode = #tpu.pipeline_mode<synchronous>, transform_indices = @transform_3, window_bounds = array<i64: 512, 256>}, {pipeline_mode = #tpu.pipeline_mode<synchronous>, transform_indices = @transform_4, window_bounds = array<i64: 1, 256>}, {pipeline_mode = #tpu.pipeline_mode<synchronous>, transform_indices = @transform_5, window_bounds = array<i64: 256, 128>}, {pipeline_mode = #tpu.pipeline_mode<synchronous>, transform_indices = @transform_6, window_bounds = array<i64: 1, 128>}, {transform_indices = @transform_7, window_bounds = array<i64: 8, 128>}]} {
    %c0 = arith.constant 0 : index
    %c0_0 = arith.constant 0 : index
    %0 = vector.load %arg1[%c0, %c0_0] : memref<8x32xf32, #tpu.memory_space<vmem>>, vector<8x32xf32>
    %1 = arith.truncf %0 : vector<8x32xf32> to vector<8x32xbf16>
    %c0_1 = arith.constant 0 : index
    %c0_2 = arith.constant 0 : index
    %2 = vector.load %arg2[%c0_1, %c0_2] : memref<32x512xbf16, #tpu.memory_space<vmem>>, vector<32x512xbf16>
    %cst = arith.constant dense<0.000000e+00> : vector<8x512xf32>
    %3 = tpu.matmul %1, %2, %cst {dimension_numbers = #tpu.dot_dimension_numbers<[1], [0], [0], [1], [0, 0, 1, 1], [], []>} : vector<8x32xbf16>, vector<32x512xbf16>, vector<8x512xf32> -> vector<8x512xf32>
    %c0_3 = arith.constant 0 : index
    %c0_4 = arith.constant 0 : index
    %4 = vector.load %arg3[%c0_3, %c0_4] : memref<1x512xf32, #tpu.memory_space<vmem>>, vector<1x512xf32>
    %5 = vector.broadcast %4 : vector<1x512xf32> to vector<8x512xf32>
    %6 = arith.addf %3, %5 : vector<8x512xf32>
    %cst_5 = arith.constant 0.000000e+00 : f32
    %7 = vector.broadcast %cst_5 : f32 to vector<8x512xf32>
    %8 = arith.maximumf %6, %7 : vector<8x512xf32>
    %9 = arith.truncf %8 : vector<8x512xf32> to vector<8x512xbf16>
    %c0_6 = arith.constant 0 : index
    %c0_7 = arith.constant 0 : index
    %10 = vector.load %arg4[%c0_6, %c0_7] : memref<512x256xbf16, #tpu.memory_space<vmem>>, vector<512x256xbf16>
    %cst_8 = arith.constant dense<0.000000e+00> : vector<8x256xf32>
    %11 = tpu.matmul %9, %10, %cst_8 {dimension_numbers = #tpu.dot_dimension_numbers<[1], [0], [0], [1], [0, 0, 1, 1], [], []>} : vector<8x512xbf16>, vector<512x256xbf16>, vector<8x256xf32> -> vector<8x256xf32>
    %c0_9 = arith.constant 0 : index
    %c0_10 = arith.constant 0 : index
    %12 = vector.load %arg5[%c0_9, %c0_10] : memref<1x256xf32, #tpu.memory_space<vmem>>, vector<1x256xf32>
    %13 = vector.broadcast %12 : vector<1x256xf32> to vector<8x256xf32>
    %14 = arith.addf %11, %13 : vector<8x256xf32>
    %cst_11 = arith.constant 0.000000e+00 : f32
    %15 = vector.broadcast %cst_11 : f32 to vector<8x256xf32>
    %16 = arith.maximumf %14, %15 : vector<8x256xf32>
    %17 = arith.truncf %16 : vector<8x256xf32> to vector<8x256xbf16>
    %c0_12 = arith.constant 0 : index
    %c0_13 = arith.constant 0 : index
    %18 = vector.load %arg6[%c0_12, %c0_13] : memref<256x128xbf16, #tpu.memory_space<vmem>>, vector<256x128xbf16>
    %cst_14 = arith.constant dense<0.000000e+00> : vector<8x128xf32>
    %19 = tpu.matmul %17, %18, %cst_14 {dimension_numbers = #tpu.dot_dimension_numbers<[1], [0], [0], [1], [0, 0, 1, 1], [], []>} : vector<8x256xbf16>, vector<256x128xbf16>, vector<8x128xf32> -> vector<8x128xf32>
    %c0_15 = arith.constant 0 : index
    %c0_16 = arith.constant 0 : index
    %20 = vector.load %arg7[%c0_15, %c0_16] : memref<1x128xf32, #tpu.memory_space<vmem>>, vector<1x128xf32>
    %21 = vector.broadcast %20 : vector<1x128xf32> to vector<8x128xf32>
    %22 = arith.addf %19, %21 : vector<8x128xf32>
    %23 = arith.truncf %22 : vector<8x128xf32> to vector<8x128xbf16>
    %c0_17 = arith.constant 0 : index
    %c0_18 = arith.constant 0 : index
    %24 = vector.load %arg8[%c0_17, %c0_18] : memref<8x128xbf16, #tpu.memory_space<vmem>>, vector<8x128xbf16>
    tpu.vector_store %arg8[%c0_17, %c0_18], %23 {strides = array<i32>} : memref<8x128xbf16, #tpu.memory_space<vmem>>, vector<8x128xbf16>,
    return
  }
  func.func @transform_0(%arg0: i32) -> (i32, i32) {
    %c0_i32 = arith.constant 0 : i32
    %c0_i32_0 = arith.constant 0 : i32
    return %arg0, %c0_i32 : i32, i32
  }
  func.func @transform_1(%arg0: i32) -> (i32, i32) {
    %c0_i32 = arith.constant 0 : i32
    %c0_i32_0 = arith.constant 0 : i32
    %c0_i32_1 = arith.constant 0 : i32
    return %c0_i32, %c0_i32_0 : i32, i32
  }
  func.func @transform_2(%arg0: i32) -> (i32, i32) {
    %c0_i32 = arith.constant 0 : i32
    %c0_i32_0 = arith.constant 0 : i32
    %c0_i32_1 = arith.constant 0 : i32
    return %c0_i32, %c0_i32_0 : i32, i32
  }
  func.func @transform_3(%arg0: i32) -> (i32, i32) {
    %c0_i32 = arith.constant 0 : i32
    %c0_i32_0 = arith.constant 0 : i32
    %c0_i32_1 = arith.constant 0 : i32
    return %c0_i32, %c0_i32_0 : i32, i32
  }
  func.func @transform_4(%arg0: i32) -> (i32, i32) {
    %c0_i32 = arith.constant 0 : i32
    %c0_i32_0 = arith.constant 0 : i32
    %c0_i32_1 = arith.constant 0 : i32
    return %c0_i32, %c0_i32_0 : i32, i32
  }
  func.func @transform_5(%arg0: i32) -> (i32, i32) {
    %c0_i32 = arith.constant 0 : i32
    %c0_i32_0 = arith.constant 0 : i32
    %c0_i32_1 = arith.constant 0 : i32
    return %c0_i32, %c0_i32_0 : i32, i32
  }
  func.func @transform_6(%arg0: i32) -> (i32, i32) {
    %c0_i32 = arith.constant 0 : i32
    %c0_i32_0 = arith.constant 0 : i32
    %c0_i32_1 = arith.constant 0 : i32
    return %c0_i32, %c0_i32_0 : i32, i32
  }
  func.func @transform_7(%arg0: i32) -> (i32, i32) {
    %c0_i32 = arith.constant 0 : i32
    %c0_i32_0 = arith.constant 0 : i32
    return %arg0, %c0_i32 : i32, i32
  }
}

</mosaic_0001>

<bundles_post_ra>
// kernel: mlp_forward.1
= control target key start
LH: loop header
LB: loop body
LE: loop exit
PB: predicated region body
PF: predicated region fallthrough
CT: control target
= control target key end

     0   :  { %12 = vsyncpa [#allocation3], 0  ;;  %s2223_s0 = inlined_call_operand.hbm [shape: f32[16,32], index: 0, kind: input, shape index: {}]   ;;  %s2224_s1 = inlined_call_operand.hbm [shape: bf16[32,512], index: 1, kind: input, shape index: {}]   ;;  %s2225_s2 = inlined_call_operand.hbm [shape: f32[1,512], index: 2, kind: input, shape index: {}]   ;;  %s2226_s3 = inlined_call_operand.hbm [shape: bf16[512,256], index: 3, kind: input, shape index: {}]   ;;  %s2227_s4 = inlined_call_operand.vmem [shape: f32[1,256], index: 4, kind: input, shape index: {}]   ;;  %s2228_s5 = inlined_call_operand.hbm [shape: bf16[256,128], index: 5, kind: input, shape index: {}]   ;;  %s2229_s6 = inlined_call_operand.vmem [shape: f32[1,128], index: 6, kind: input, shape index: {}]   ;;  %s2230_s7 = inlined_call_operand.hbm [shape: bf16[16,128], index: 7, kind: output, shape index: {}]  }
   0x1   :  { %14 = vsyncpa [#allocation3 + $0x1], 0 }
   0x2   :  { %15 = vsyncpa [#allocation6], 0 }
   0x3   :  { %16 = vsyncpa [#allocation9], 0 }
   0x4   :  { %17 = vsyncpa [#allocation4], 0 }
   0x5   :  { %19 = vsyncpa [#allocation4 + $0x1], 0  ;;  %s1924_s24 = smov 0   ;;  %s1926_s25 = smov 0  }
   0x6   :  { %s1928_s26 = smov 0   ;;  %s1930_s27 = smov 0  }
   0x7 LB: > { %s1871_s28 = smov [#allocation5]   ;;  %s1945_s30 = sadd.s32 4294967295, %s1869_s27   ;;  %s1869_s27 = sphi %s1930_s27, %s2254_s27   ;;  %s1865_s26 = sphi %s1928_s26, %s2253_s26   ;;  %s1861_s25 = sphi %s1926_s25, %s2252_s25   ;;  %s1857_s24 = sphi %s1924_s24, %s2251_s24  }
   0x8   : > { %s220_s29 = sshll.u32 %s1871_s28, 4  ;;  %p1299_p0 = scmp.ge.s32.totalorder %s1869_s27, 1  ;;  %s1950_s29 = int_to_ptr.vmem [resolvable:$true] %s220_s29 }
   0x9   : > { %p2231_p1 = scmp.eq.s32.totalorder %s1945_s30, 0  ;;  %p208_p2 = scmp.lt.s32.totalorder %s1869_s27, 3 }
   0xa   : > { %s1872_s9 = smov [#allocation8]   ;;  %s1873_s12 = smov [#allocation7]  }
   0xb   : > { %p1952_p3 = pnand %p1299_p0, %p208_p2  ;;  %s244_s10 = sshll.u32 %s1872_s9, 4  ;;  %s1965_s10 = int_to_ptr.vmem [resolvable:$true] %s244_s10 }
   0xc   : > { %s1967_s13 = sshll.u32 %s1873_s12, 4  ;;  %s1653_s16 = scalar_lea.hbm %s2224_s1, 1024  ;;  %s235_s13 = int_to_ptr.vmem [resolvable:$true] %s1967_s13 }
   0xd   : > { %s2234_s8 = scalar_select %p1952_p3, 1, 0 }
   0xe   : > { %p1455_p5 = pneg %p1952_p3  ;;  %p1654_p7 = scmp.ne.s32.totalorder %s2224_s1, %s1653_s16 }
   0xf   : > { %p1660_p11 = scmp.lt.u32.totalorder %s1653_s16, %s2224_s1 }
  0x10   : > { %p1961_p6 = pnand %p1455_p5, %p2231_p1 }
  0x12   : > { %p1977_p8 = pneg %p1961_p6 }
  0x14   : > { %p1656_p9 = pnand %p1977_p8, %p1654_p7 }
  0x16   : > { %p1657_p10 = pneg %p1656_p9 }
  0x18   : > { %p1662_p12 = pnand %p1660_p11, %p1657_p10 }
  0x1a   : > { %1665 = shalt.err (!%p1662_p12)
}
  0x1b   : > { %s1666_s22 = scalar_lea.vmem %s1950_s29, 1024  ;;  %p1674_p5 = scmp.lt.s32.totalorder %s1950_s29, %s1950_s29 }
  0x1c   : > { %p1667_p13 = scmp.ne.s32.totalorder %s1950_s29, %s1666_s22  ;;  %p1675_p4 = scmp.lt.s32.totalorder %s1666_s22, %s1666_s22 }
  0x1e   : > { %p1669_p0 = pnand %p1667_p13, %p1977_p8  ;;  %p1676_p7 = por %p1675_p4, %p1674_p5 }
  0x20   : > { %p1670_p2 = pneg %p1669_p0 }
  0x22   : > { %p1677_p9 = pnand %p1676_p7, %p1670_p2 }
  0x24   : > { %1680 = shalt.err (!%p1677_p9)
}
  0x25   : > { %s1874_s23 = smov 256   ;;  %s1875_s28 = smov 16  }
  0x26   : > { %1458 = dma.hbm_to_vmem [thread:$0]  (!%p1961_p6), %s2224_s1, 1024, %s1950_s29, [#allocation6], %s1874_s23, %s1874_s23, %s1875_s28  }
  0x27   : > { %s1681_s16 = scalar_lea.hbm %s2226_s3, 8192 }
  0x28   : > { %p1682_p4 = scmp.ne.s32.totalorder %s2226_s3, %s1681_s16  ;;  %p1688_p12 = scmp.lt.u32.totalorder %s1681_s16, %s2226_s3 }
  0x2a   : > { %p1684_p10 = pnand %p1682_p4, %p1977_p8 }
  0x2c   : > { %p1685_p11 = pneg %p1684_p10 }
  0x2e   : > { %p1690_p13 = pnand %p1688_p12, %p1685_p11 }
  0x30   : > { %1693 = shalt.err (!%p1690_p13)
}
  0x31   : > { %s1694_s29 = scalar_lea.vmem %s1965_s10, 8192  ;;  %p1702_p7 = scmp.lt.s32.totalorder %s1965_s10, %s1965_s10 }
  0x32   : > { %p1695_p0 = scmp.ne.s32.totalorder %s1965_s10, %s1694_s29  ;;  %p1703_p9 = scmp.lt.s32.totalorder %s1694_s29, %s1694_s29 }
  0x34   : > { %p1697_p2 = pnand %p1695_p0, %p1977_p8  ;;  %p1704_p4 = por %p1703_p9, %p1702_p7 }
  0x36   : > { %p1698_p5 = pneg %p1697_p2 }
  0x38   : > { %p1705_p10 = pnand %p1704_p4, %p1698_p5 }
  0x3a   : > { %1708 = shalt.err (!%p1705_p10)
}
  0x3b   : > { %s1876_s22 = smov 128   ;;  %s1877_s23 = smov 8  }
  0x3c   : > { %1464 = dma.hbm_to_vmem [thread:$0]  (!%p1961_p6), %s2226_s3, 8192, %s1965_s10, [#allocation9], %s1876_s22, %s1876_s22, %s1877_s23  }
  0x3d   : > { %s1709_s15 = scalar_lea.hbm %s2225_s2, 64 }
  0x3e   : > { %p1710_p11 = scmp.ne.s32.totalorder %s2225_s2, %s1709_s15  ;;  %p1716_p0 = scmp.lt.u32.totalorder %s1709_s15, %s2225_s2 }
  0x40   : > { %p1712_p12 = pnand %p1710_p11, %p1977_p8 }
  0x42   : > { %p1713_p13 = pneg %p1712_p12 }
  0x44   : > { %p1718_p2 = pnand %p1716_p0, %p1713_p13 }
  0x46   : > { %1721 = shalt.err (!%p1718_p2)
}
  0x47   : > { %s1722_s21 = scalar_lea.vmem %s235_s13, 64  ;;  %p1730_p4 = scmp.lt.s32.totalorder %s235_s13, %s235_s13 }
  0x48   : > { %p1723_p5 = scmp.ne.s32.totalorder %s235_s13, %s1722_s21  ;;  %p1731_p10 = scmp.lt.s32.totalorder %s1722_s21, %s1722_s21 }
  0x4a   : > { %p1725_p7 = pnand %p1723_p5, %p1977_p8  ;;  %p1732_p1 = por %p1731_p10, %p1730_p4 }
  0x4c   : > { %p1726_p9 = pneg %p1725_p7 }
  0x4e   : > { %p1733_p3 = pnand %p1732_p1, %p1726_p9 }
  0x50   : > { %1736 = shalt.err (!%p1733_p3)
}
  0x51   : > { %1461 = dma.hbm_to_vmem [thread:$0]  (!%p1961_p6), %s2225_s2, 64, %s235_s13, [#allocation6]  }
  0x52   : > { %s1878_s22 = smov [#allocation10]   ;;  %s1737_s12 = scalar_lea.hbm %s2228_s5, 2048 }
  0x53   : > { %s260_s23 = sshll.u32 %s1878_s22, 4  ;;  %p1738_p11 = scmp.ne.s32.totalorder %s2228_s5, %s1737_s12  ;;  %s261_s23 = int_to_ptr.vmem [resolvable:$true] %s260_s23 }
  0x54   : > { %p1744_p12 = scmp.lt.u32.totalorder %s1737_s12, %s2228_s5 }
  0x55   : > { %p1740_p1 = pnand %p1738_p11, %p1977_p8 }
  0x57   : > { %p1741_p3 = pneg %p1740_p1 }
  0x59   : > { %p1746_p13 = pnand %p1744_p12, %p1741_p3 }
  0x5b   : > { %1749 = shalt.err (!%p1746_p13)
}
  0x5c   : > { %s1750_s13 = scalar_lea.vmem %s261_s23, 2048  ;;  %p1758_p7 = scmp.lt.s32.totalorder %s261_s23, %s261_s23 }
  0x5d   : > { %p1751_p0 = scmp.ne.s32.totalorder %s261_s23, %s1750_s13  ;;  %p1759_p9 = scmp.lt.s32.totalorder %s1750_s13, %s1750_s13 }
  0x5f   : > { %p1753_p2 = pnand %p1751_p0, %p1977_p8  ;;  %p1760_p4 = por %p1759_p9, %p1758_p7 }
  0x61   : > { %p1754_p5 = pneg %p1753_p2 }
  0x63   : > { %p1761_p10 = pnand %p1760_p4, %p1754_p5 }
  0x65   : > { %1764 = shalt.err (!%p1761_p10)
}
  0x66   : > { %s1879_s18 = smov 64   ;;  %s1880_s19 = smov 4  }
  0x67   : > { %1467 = dma.hbm_to_vmem [thread:$0]  (!%p1961_p6), %s2228_s5, 2048, %s261_s23, [#allocation9], %s1879_s18, %s1879_s18, %s1880_s19  }
  0x68   : > { %s1298_s10 = sadd.s32 4294967294, %s1869_s27   ;;  %s2060_s29 = sadd.s32 1, %s1869_s27  }
  0x69   : > { %s29_s22 = ssub.s32 %s1869_s27, %s2060_s29  ;;  %s32_s28 = sadd.s32 1, %s1865_s26 }
  0x6a   : > { %p30_p8 = scmp.eq.s32.totalorder %s29_s22, 0  ;;  %p39_p11 = scmp.ne.s32.totalorder %s1865_s26, %s1861_s25 }
  0x6b   : > { %p40_p1 = scmp.eq.s32.totalorder %s1869_s27, 0  ;;  %p45_p3 = scmp.ne.s32.totalorder %s1861_s25, %s1857_s24 }
  0x6c   : > { %s2071_s9 = scalar_select %p30_p8, %s1865_s26, %s32_s28  }
  0x6d   : > { %p2073_p12 = por %p40_p1, %p39_p11  ;;  %p2238_p13 = scmp.eq.s32.totalorder %s1945_s30, 0 }
  0x6e   : > { %p195_p0 = scmp.eq.s32.totalorder %s1945_s30, 1  ;;  %p201_p2 = scmp.eq.s32.totalorder %s1298_s10, 1 }
  0x6f   : > { %p2079_p6 = por %p2238_p13, %p45_p3  ;;  %p1480_p5 = scmp.lt.s32.totalorder %s1869_s27, 2 }
  0x70   : > { %s277_s12 = sand.u32 1, %s1865_s26   ;;  %p2086_p7 = por %p195_p0, %p39_p11 }
  0x71   : > { %p2090_p9 = por %p201_p2, %p45_p3  ;;  %s1305_s16 = sshll.u32 %s277_s12, 3 }
  0x72   : > { %s2240_s14 = scalar_select %p2086_p7, 1, 0 }
  0x73   : > { %s2241_s15 = scalar_select %p2090_p9, 1, 0 }
  0x74   : > { %s1306_s17 = sshll.u32 %s1869_s27, 7  ;;  %s281_s20 = scalar_lea.vmem [#allocation2], %s1305_s16 }
  0x75   : > { %s2098_s19 = scalar_lea.hbm %s2223_s0, %s1306_s17  ;;  %s288_s21 = sshll.u32 %s281_s20, 4  ;;  %s2100_s21 = int_to_ptr.vmem [resolvable:$true] %s288_s21 }
  0x76   : > { %p2104_p4 = pnand %p1480_p5, %p2073_p12  ;;  %s278_s22 = scalar_lea.sflag [#allocation3], %s277_s12 }
  0x77   : > { %s1765_s28 = scalar_lea.hbm %s2098_s19, 128  ;;  %s1770_s13 = scalar_lea.hbm %s2223_s0, 256 }
  0x78   : > { %p1766_p10 = scmp.ne.s32.totalorder %s2098_s19, %s1765_s28  ;;  %p1767_p8 = pneg %p2104_p4 }
  0x79   : > { %p1771_p3 = scmp.lt.u32.totalorder %s2098_s19, %s2223_s0  ;;  %p1772_p12 = scmp.lt.u32.totalorder %s1770_s13, %s1765_s28 }
  0x7a   : > { %p1768_p11 = pnand %p1767_p8, %p1766_p10  ;;  %p1774_p0 = scmp.lt.u32.totalorder %s1765_s28, %s2098_s19 }
  0x7b   : > { %p1773_p13 = por %p1772_p12, %p1771_p3 }
  0x7c   : > { %p1769_p1 = pneg %p1768_p11 }
  0x7d   : > { %p1775_p2 = por %p1774_p0, %p1773_p13 }
  0x7f   : > { %p1776_p5 = pnand %p1775_p2, %p1769_p1 }
  0x81   : > { %1779 = shalt.err (!%p1776_p5)
}
  0x82   : > { %s1780_s12 = scalar_lea.vmem %s2100_s21, 128  ;;  %s1881_s20 = smov [#allocation2]  }
  0x83   : > { %p1781_p10 = scmp.ne.s32.totalorder %s2100_s21, %s1780_s12  ;;  %s1785_s16 = sshll.u32 %s1881_s20, 4  ;;  %s1786_s16 = int_to_ptr.vmem [resolvable:$false] %s1785_s16 }
  0x84   : > { %s1787_s17 = scalar_lea.vmem %s1786_s16, 256  ;;  %p1788_p7 = scmp.lt.s32.totalorder %s2100_s21, %s1786_s16 }
  0x85   : > { %p1783_p11 = pnand %p1781_p10, %p1767_p8  ;;  %p1789_p3 = scmp.lt.s32.totalorder %s1787_s17, %s1780_s12 }
  0x87   : > { %p1784_p9 = pneg %p1783_p11  ;;  %p1790_p12 = por %p1789_p3, %p1788_p7 }
  0x89   : > { %p1791_p13 = pnand %p1790_p12, %p1784_p9 }
  0x8b   : > { %1794 = shalt.err (!%p1791_p13)
}
  0x8c   : > { %1471 = dma.hbm_to_vmem [thread:$0]  (!%p2104_p4), %s2098_s19, 128, %s2100_s21, %s278_s22  }
  0x8d   : > { %p2243_p1 = scmp.ne.s32.totalorder %s2234_s8, 0 }
  0x8e   : > { %s2136_s28 = sand.u32 (!%p2243_p1), 1, %s1861_s25  }
  0x8f   : > { %297 = sbr.rel (%p2243_p1) target bundleno = 847 (0x34f), region = 48  ;;  %s1308_s13 = sshll.u32 (!%p2243_p1), %s2136_s28, 3 }
  0x90   : > { %s300_s11 = scalar_lea.sflag (!%p2243_p1), [#allocation3], %s2136_s28  ;;  %s303_s18 = scalar_lea.vmem (!%p2243_p1), [#allocation2], %s1308_s13 }
  0x96   : > { %1840 = dma.done.wait (%p2079_p6), %s300_s11, 128  }
  0x97   : > { %1842 = vsyncadd (%p2079_p6), %s300_s11, 4294967168  ;;  %p2244_p7 = scmp.eq.s32.totalorder %s1945_s30, 0 }
  0x99   : > { %1844 = dma.done.wait (%p2244_p7), [#allocation6], 1088   ;;  %p2245_p9 = pmov %p2244_p7 }
  0x9a   : > { %p2246_p4 = pmov %p2244_p7 }
  0x9b   : > { %1846 = vsyncadd (%p2245_p9), [#allocation6], 4294966208 }
  0x9c   : > { %1848 = dma.done.wait (%p2246_p4), [#allocation9], 10240   ;;  %p2247_p8 = pmov %p2246_p4 }
  0x9d   : > { %v1882_v0 = vmov 0   ;;  %v1529_v1 = vld [vmem:[#allocation5 + $0x4] ss:$16 sps:$4 sm:$0xff]   ;;  %v1531_v2 = vld [vmem:[#allocation5] ss:$16 sps:$4 sm:$0xff]   ;;  %vm423_vm0 = vcmask 261120  }
  0x9e   : > { %1850 = vsyncadd (%p2247_p8), [#allocation9], 4294957056  ;;  %459 = vmatprep.mubr.bf16.mxu0 %v1882_v0  ;;  %427 = vmatprep.subr.bf16.mxu0 %v1529_v1  ;;  %v1532_v3 = vld [vmem:[#allocation5 + $0x24] ss:$16 sps:$4 sm:$0xff]   ;;  %v1534_v4 = vld [vmem:[#allocation5 + $0x20] ss:$16 sps:$4 sm:$0xff]  }
  0x9f   : > { %428 = vmatpush1.bf16.msra.mxu0 %v1531_v2  ;;  %v351_v5 = vld [vmem:[%s303_s18] sm:$0xff]  ;;  %v1543_v10 = vld [vmem:[#allocation8] ss:$8 sps:$4 sm:$0xff]   ;;  %s1313_s19 = sshll.u32 %s2136_s28, 2  ;;  %s1406_s22 = sshll.u32 %s1945_s30, 6 }
  0xa0   : > { %429 = vmatprep.subr.bf16.mxu0 %v1532_v3  ;;  %v1537_v6 = vld [vmem:[#allocation5 + $0xc] ss:$16 sps:$4 sm:$0xff]   ;;  %v1535_v7 = vld [vmem:[#allocation5 + $0x8] ss:$16 sps:$4 sm:$0xff]   ;;  %v352_v8 = vpack.c.bf16 %v351_v5, %v351_v5  ;;  %s349_s12 = scalar_lea.vmem [#allocation11], %s1313_s19  ;;  %s2179_s13 = scalar_lea.hbm %s2230_s7, %s1406_s22 }
  0xa1   : > { %v1541_v9 = vld [vmem:[#allocation8 + $0x4] ss:$8 sps:$4 sm:$0xff]   ;;  %v1544_v11 = vld [vmem:[#allocation8 + $0x14] ss:$8 sps:$4 sm:$0xff]   ;;  %v1540_v12 = vld [vmem:[#allocation5 + $0x2c] ss:$16 sps:$4 sm:$0xff]  }
  0xa2   : > { %913 = vmatprep.subr.bf16.mxu1 %v1541_v9  ;;  %v1546_v13 = vld [vmem:[#allocation8 + $0x10] ss:$8 sps:$4 sm:$0xff]   ;;  %v1547_v14 = vld [vmem:[#allocation8 + $0x24] ss:$8 sps:$4 sm:$0xff]   ;;  %v1552_v17 = vld [vmem:[#allocation8 + $0x20] ss:$8 sps:$4 sm:$0xff]  }
  0xa3   : > { %430 = vmatpush1.bf16.msra.mxu0 %v1534_v4  ;;  %914 = vmatpush1.bf16.msra.mxu1 %v1543_v10  ;;  %v1538_v15 = vld [vmem:[#allocation5 + $0x28] ss:$16 sps:$4 sm:$0xff]   ;;  %v1549_v19 = vld [vmem:[#allocation8 + $0x100] ss:$8 sps:$4 sm:$0xff]   ;;  %v1558_v21 = vld [vmem:[#allocation8 + $0x30] ss:$8 sps:$4 sm:$0xff]  }
  0xa4   : > { %468 = vmatprep.subr.bf16.mxu0 %v1537_v6  ;;  %915 = vmatprep.subr.bf16.mxu1 %v1544_v11  ;;  %v1551_v16 = vld [vmem:[#allocation8 + $0x104] ss:$8 sps:$4 sm:$0xff]   ;;  %v1553_v18 = vld [vmem:[#allocation8 + $0x34] ss:$8 sps:$4 sm:$0xff]   ;;  %v1555_v23 = vld [vmem:[#allocation8 + $0x110] ss:$8 sps:$4 sm:$0xff]  }
  0xa5   : > { %v1557_v20 = vld [vmem:[#allocation8 + $0x114] ss:$8 sps:$4 sm:$0xff]   ;;  %v1559_v22 = vld [vmem:[#allocation8 + $0x44] ss:$8 sps:$4 sm:$0xff]   ;;  %v1564_v25 = vld [vmem:[#allocation8 + $0x40] ss:$8 sps:$4 sm:$0xff]  }
  0xa6   : > { %1322 = vmatmul.mubr.msk.bf16.vlgmr.msra.gmra.mrb[0].mxu0 %vm423_vm0, %v352_v8  ;;  %v1563_v24 = vld [vmem:[#allocation8 + $0x124] ss:$8 sps:$4 sm:$0xff]   ;;  %v1565_v26 = vld [vmem:[#allocation8 + $0x54] ss:$8 sps:$4 sm:$0xff]   ;;  %v1561_v27 = vld [vmem:[#allocation8 + $0x120] ss:$8 sps:$4 sm:$0xff]  }
  0xa7   : > { %469 = vmatpush1.bf16.msra.mxu0 %v1535_v7  ;;  %500 = vmatprep.mubr.bf16.mxu0 %v1882_v0  ;;  %v1569_v28 = vld [vmem:[#allocation8 + $0x134] ss:$8 sps:$4 sm:$0xff]   ;;  %v1570_v29 = vld [vmem:[#allocation8 + $0x50] ss:$8 sps:$4 sm:$0xff]   ;;  %v1571_v30 = vld [vmem:[#allocation8 + $0x64] ss:$8 sps:$4 sm:$0xff]  }
  0xa8   : > { %470 = vmatprep.subr.bf16.mxu0 %v1540_v12  ;;  %916 = vmatpush1.bf16.msra.mxu1 %v1546_v13  ;;  %v1567_v31 = vld [vmem:[#allocation8 + $0x130] ss:$8 sps:$4 sm:$0xff]   ;;  %v1575_v32 = vld [vmem:[#allocation8 + $0x144] ss:$8 sps:$4 sm:$0xff]   ;;  %v1576_v33 = vld [vmem:[#allocation8 + $0x60] ss:$8 sps:$4 sm:$0xff]   ;;  %v363_v12 = vlaneseq }
  0xa9   : > { %917 = vmatprep.subr.bf16.mxu1 %v1547_v14  ;;  %v1577_v34 = vld [vmem:[#allocation8 + $0x74] ss:$8 sps:$4 sm:$0xff]   ;;  %v1573_v35 = vld [vmem:[#allocation8 + $0x140] ss:$8 sps:$4 sm:$0xff]   ;;  %v1582_v37 = vld [vmem:[#allocation8 + $0x70] ss:$8 sps:$4 sm:$0xff]  }
  0xaa   : > { %v1581_v36 = vld [vmem:[#allocation8 + $0x154] ss:$8 sps:$4 sm:$0xff]   ;;  %v1583_v38 = vld [vmem:[#allocation8 + $0x84] ss:$8 sps:$4 sm:$0xff]   ;;  %v1579_v39 = vld [vmem:[#allocation8 + $0x150] ss:$8 sps:$4 sm:$0xff]  }
  0xab   : > { %471 = vmatpush1.bf16.msra.mxu0 %v1538_v15  ;;  %v1587_v40 = vld [vmem:[#allocation8 + $0x164] ss:$8 sps:$4 sm:$0xff]   ;;  %v1588_v41 = vld [vmem:[#allocation8 + $0x80] ss:$8 sps:$4 sm:$0xff]   ;;  %v1589_v42 = vld [vmem:[#allocation8 + $0x94] ss:$8 sps:$4 sm:$0xff]  }
  0xac   : > { %954 = vmatprep.subr.bf16.mxu0 %v1551_v16  ;;  %918 = vmatpush1.bf16.msra.mxu1 %v1552_v17  ;;  %v1585_v43 = vld [vmem:[#allocation8 + $0x160] ss:$8 sps:$4 sm:$0xff]   ;;  %v1593_v44 = vld [vmem:[#allocation8 + $0x174] ss:$8 sps:$4 sm:$0xff]   ;;  %v1594_v45 = vld [vmem:[#allocation8 + $0x90] ss:$8 sps:$4 sm:$0xff]  }
  0xad   : > { %919 = vmatprep.subr.bf16.mxu1 %v1553_v18  ;;  %v1595_v46 = vld [vmem:[#allocation8 + $0xa4] ss:$8 sps:$4 sm:$0xff]   ;;  %v1591_v47 = vld [vmem:[#allocation8 + $0x170] ss:$8 sps:$4 sm:$0xff]   ;;  %v1600_v49 = vld [vmem:[#allocation8 + $0xa0] ss:$8 sps:$4 sm:$0xff]  }
  0xae   : > { %1323 = vmatmul.mubr.msk.bf16.vlgmr.msra.gmra.mrb[4].mxu0 %vm423_vm0, %v352_v8  ;;  %v1599_v48 = vld [vmem:[#allocation8 + $0x184] ss:$8 sps:$4 sm:$0xff]   ;;  %v1601_v50 = vld [vmem:[#allocation8 + $0xb4] ss:$8 sps:$4 sm:$0xff]   ;;  %v1597_v51 = vld [vmem:[#allocation8 + $0x180] ss:$8 sps:$4 sm:$0xff]  }
  0xaf   : > { %955 = vmatpush1.bf16.msra.mxu0 %v1549_v19  ;;  %v1605_v52 = vld [vmem:[#allocation8 + $0x194] ss:$8 sps:$4 sm:$0xff]   ;;  %v1606_v53 = vld [vmem:[#allocation8 + $0xb0] ss:$8 sps:$4 sm:$0xff]   ;;  %v1607_v54 = vld [vmem:[#allocation8 + $0xc4] ss:$8 sps:$4 sm:$0xff]  }
  0xb0   : > { %956 = vmatprep.subr.bf16.mxu0 %v1557_v20  ;;  %920 = vmatpush1.bf16.msra.mxu1 %v1558_v21  ;;  %v1603_v55 = vld [vmem:[#allocation8 + $0x190] ss:$8 sps:$4 sm:$0xff]   ;;  %v1611_v56 = vld [vmem:[#allocation8 + $0x1a4] ss:$8 sps:$4 sm:$0xff]   ;;  %v1612_v57 = vld [vmem:[#allocation8 + $0xc0] ss:$8 sps:$4 sm:$0xff]  }
  0xb1   : > { %921 = vmatprep.subr.bf16.mxu1 %v1559_v22  ;;  %v1613_v58 = vld [vmem:[#allocation8 + $0xd4] ss:$8 sps:$4 sm:$0xff]   ;;  %v1609_v59 = vld [vmem:[#allocation8 + $0x1a0] ss:$8 sps:$4 sm:$0xff]   ;;  %v1618_v61 = vld [vmem:[#allocation8 + $0xd0] ss:$8 sps:$4 sm:$0xff]  }
  0xb2   : > { %v1617_v60 = vld [vmem:[#allocation8 + $0x1b4] ss:$8 sps:$4 sm:$0xff]   ;;  %v1615_v62 = vld [vmem:[#allocation8 + $0x1b0] ss:$8 sps:$4 sm:$0xff]   ;;  %v1619_v63 = vld [vmem:[#allocation8 + $0xe4] ss:$8 sps:$4 sm:$0xff]  }
  0xb3   : > { %957 = vmatpush1.bf16.msra.mxu0 %v1555_v23  ;;  %v1623_v0 = vld [vmem:[#allocation8 + $0x1c4] ss:$8 sps:$4 sm:$0xff]   ;;  %v1621_v1 = vld [vmem:[#allocation8 + $0x1c0] ss:$8 sps:$4 sm:$0xff]   ;;  %v1625_v3 = vld [vmem:[#allocation8 + $0xf4] ss:$8 sps:$4 sm:$0xff]  }
  0xb4   : > { %958 = vmatprep.subr.bf16.mxu0 %v1563_v24  ;;  %922 = vmatpush1.bf16.msra.mxu1 %v1564_v25  ;;  %v1624_v2 = vld [vmem:[#allocation8 + $0xe0] ss:$8 sps:$4 sm:$0xff]   ;;  %v1629_v4 = vld [vmem:[#allocation8 + $0x1d4] ss:$8 sps:$4 sm:$0xff]   ;;  %v1627_v5 = vld [vmem:[#allocation8 + $0x1d0] ss:$8 sps:$4 sm:$0xff]  }
  0xb5   : > { %923 = vmatprep.subr.bf16.mxu1 %v1565_v26  ;;  %v1630_v6 = vld [vmem:[#allocation8 + $0xf0] ss:$8 sps:$4 sm:$0xff]   ;;  %v1633_v7 = vld [vmem:[#allocation8 + $0x1e4] ss:$8 sps:$4 sm:$0xff]   ;;  %v1631_v8 = vld [vmem:[#allocation8 + $0x1e0] ss:$8 sps:$4 sm:$0xff]  }
  0xb6   : > { %v1636_v9 = vld [vmem:[#allocation8 + $0x1f4] ss:$8 sps:$4 sm:$0xff]   ;;  %v1634_v10 = vld [vmem:[#allocation8 + $0x1f0] ss:$8 sps:$4 sm:$0xff]   ;;  %v1637_v11 = vld [vmem:[#allocation10 + $0x40] sm:$0xff]   ;;  %v2154_v13 = vshrl.u32 %v363_v12, 7 }
  0xb7   : > { %959 = vmatpush1.bf16.msra.mxu0 %v1561_v27  ;;  %v361_v15 = vld [vmem:[#allocation7] sm:$0xf]  ;;  %s1190_s20 = sshll.u32 %s349_s12, 4  ;;  %s1177_s11 = scalar_lea.sflag [#allocation4], %s2136_s28  ;;  %s2181_s20 = int_to_ptr.vmem [resolvable:$true] %s1190_s20 }
  0xb8   : > { %960 = vmatprep.subr.bf16.mxu0 %v1569_v28  ;;  %924 = vmatpush1.bf16.msra.mxu1 %v1570_v29  ;;  %v365_v14 = vsub.s32 0, %v2154_v13  ;;  %v369_v16 = vsub.s32 1, %v2154_v13  ;;  %v373_v22 = vsub.s32 2, %v2154_v13  ;;  %v377_v25 = vsub.s32 3, %v2154_v13  ;;  %s1795_s18 = scalar_lea.vmem %s2181_s20, 64  ;;  %p2248_p0 = scmp.ne.s32.totalorder %s2240_s14, 0 }
  0xb9   : > { %925 = vmatprep.subr.bf16.mxu1 %v1571_v30  ;;  %p1796_p6 = scmp.ne.s32.totalorder %s2181_s20, %s1795_s18  ;;  %s1883_s30 = smov [#allocation11]  }
  0xba   : > { %v366_v17 = vrot.slane %v361_v15, %v365_v14  ;;  %v370_v18 = vrot.slane %v361_v15, %v369_v16  ;;  %v374_v29 = vrot.slane %v361_v15, %v373_v22  ;;  %s1799_s8 = sshll.u32 %s1883_s30, 4  ;;  %s1800_s8 = int_to_ptr.vmem [resolvable:$false] %s1799_s8 }
  0xbb   : > { %961 = vmatpush1.bf16.msra.mxu0 %v1567_v31  ;;  %v378_v31 = vrot.slane %v361_v15, %v377_v25  ;;  %p1797_p2 = pnand %p1796_p6, %p2248_p0  ;;  %s1801_s23 = scalar_lea.vmem %s1800_s8, 128 }
  0xbc   : > { %962 = vmatprep.subr.bf16.mxu0 %v1575_v32  ;;  %926 = vmatpush1.bf16.msra.mxu1 %v1576_v33  ;;  %v1638_v32 = vld [vmem:[#allocation10] sm:$0xff]   ;;  %p1802_p10 = scmp.lt.s32.totalorder %s2181_s20, %s1800_s8  ;;  %p1803_p11 = scmp.lt.s32.totalorder %s1801_s23, %s1795_s18 }
  0xbd   : > { %927 = vmatprep.subr.bf16.mxu1 %v1577_v34  ;;  %v1639_v34 = vld [vmem:[#allocation10 + $0x48] sm:$0xff]   ;;  %p1798_p5 = pneg %p1797_p2 }
  0xbe   : > { %p1804_p3 = por %p1803_p11, %p1802_p10 }
  0xbf   : > { %963 = vmatpush1.bf16.msra.mxu0 %v1573_v35 }
  0xc0   : > { %964 = vmatprep.subr.bf16.mxu0 %v1581_v36  ;;  %928 = vmatpush1.bf16.msra.mxu1 %v1582_v37  ;;  %p1805_p12 = pnand %p1804_p3, %p1798_p5 }
  0xc1   : > { %929 = vmatprep.subr.bf16.mxu1 %v1583_v38 }
  0xc3   : > { %965 = vmatpush1.bf16.msra.mxu0 %v1579_v39 }
  0xc4   : > { %966 = vmatprep.subr.bf16.mxu0 %v1587_v40  ;;  %930 = vmatpush1.bf16.msra.mxu1 %v1588_v41  ;;  %v1640_v40 = vld [vmem:[#allocation10 + $0x8] sm:$0xff]  }
  0xc5   : > { %931 = vmatprep.subr.bf16.mxu1 %v1589_v42 }
  0xc7   : > { %967 = vmatpush1.bf16.msra.mxu0 %v1585_v43  ;;  %v1641_v43 = vld [vmem:[#allocation10 + $0x50] sm:$0xff]  }
  0xc8   : > { %968 = vmatprep.subr.bf16.mxu0 %v1593_v44  ;;  %932 = vmatpush1.bf16.msra.mxu1 %v1594_v45 }
  0xc9   : > { %933 = vmatprep.subr.bf16.mxu1 %v1595_v46  ;;  %v1642_v46 = vld [vmem:[#allocation10 + $0x10] sm:$0xff]  }
  0xcb   : > { %969 = vmatpush1.bf16.msra.mxu0 %v1591_v47 }
  0xcc   : > { %970 = vmatprep.subr.bf16.mxu0 %v1599_v48  ;;  %934 = vmatpush1.bf16.msra.mxu1 %v1600_v49  ;;  %v1643_v48 = vld [vmem:[#allocation10 + $0x58] sm:$0xff]  }
  0xcd   : > { %935 = vmatprep.subr.bf16.mxu1 %v1601_v50  ;;  %v1644_v49 = vld [vmem:[#allocation10 + $0x18] sm:$0xff]   ;;  %v1645_v50 = vld [vmem:[#allocation10 + $0x60] sm:$0xff]  }
  0xcf   : > { %971 = vmatpush1.bf16.msra.mxu0 %v1597_v51  ;;  %v1646_v51 = vld [vmem:[#allocation10 + $0x20] sm:$0xff]  }
  0xd0   : > { %972 = vmatprep.subr.bf16.mxu0 %v1605_v52  ;;  %936 = vmatpush1.bf16.msra.mxu1 %v1606_v53  ;;  %v1647_v52 = vld [vmem:[#allocation10 + $0x68] sm:$0xff]  }
  0xd1   : > { %937 = vmatprep.subr.bf16.mxu1 %v1607_v54  ;;  %v1648_v53 = vld [vmem:[#allocation10 + $0x28] sm:$0xff]   ;;  %v1649_v54 = vld [vmem:[#allocation10 + $0x70] sm:$0xff]  }
  0xd3   : > { %973 = vmatpush1.bf16.msra.mxu0 %v1603_v55  ;;  %v1650_v55 = vld [vmem:[#allocation10 + $0x30] sm:$0xff]  }
  0xd4   : > { %974 = vmatprep.subr.bf16.mxu0 %v1611_v56  ;;  %938 = vmatpush1.bf16.msra.mxu1 %v1612_v57  ;;  %v1651_v56 = vld [vmem:[#allocation10 + $0x78] sm:$0xff]  }
  0xd5   : > { %939 = vmatprep.subr.bf16.mxu1 %v1613_v58  ;;  %v1652_v57 = vld [vmem:[#allocation10 + $0x38] sm:$0xff]   ;;  %v581_v58 = vld [vmem:[%s2227_s4] sm:$0x3] }
  0xd7   : > { %975 = vmatpush1.bf16.msra.mxu0 %v1609_v59 }
  0xd8   : > { %976 = vmatprep.subr.bf16.mxu0 %v1617_v60  ;;  %940 = vmatpush1.bf16.msra.mxu1 %v1618_v61 }
  0xd9   : > { %941 = vmatprep.subr.bf16.mxu1 %v1619_v63 }
  0xdb   : > { %977 = vmatpush1.bf16.msra.mxu0 %v1615_v62  ;;  %v586_v62 = vrot.slane %v581_v58, %v365_v14  ;;  %v1388_v14 = vld [vmem:[%s2229_s6] ss:$0 sm:$0xff] }
  0xdc   : > { %978 = vmatprep.subr.bf16.mxu0 %v1623_v0  ;;  %942 = vmatpush1.bf16.msra.mxu1 %v1624_v2  ;;  %v590_v0 = vrot.slane %v581_v58, %v369_v16 }
  0xdd   : > { %943 = vmatprep.subr.bf16.mxu1 %v1625_v3 }
  0xdf   : > { %979 = vmatpush1.bf16.msra.mxu0 %v1621_v1 }
  0xe0   : > { %980 = vmatprep.subr.bf16.mxu0 %v1629_v4  ;;  %944 = vmatpush1.bf16.msra.mxu1 %v1630_v6 }
  0xe1   : > { %1409 = vmatprep.subr.bf16.mxu1 %v1637_v11 }
  0xe3   : > { %981 = vmatpush1.bf16.msra.mxu0 %v1627_v5 }
  0xe4   : > { %982 = vmatprep.subr.bf16.mxu0 %v1633_v7 }
  0xe7   : > { %983 = vmatpush1.bf16.msra.mxu0 %v1631_v8 }
  0xe8   : > { %984 = vmatprep.subr.bf16.mxu0 %v1636_v9 }
  0xeb   : > { %985 = vmatpush1.bf16.msra.mxu0 %v1634_v10 }
 0x179   : > { %v461_v19 = vpop.f32.mrb[0].mxu0 }
 0x17a   : > { %v462_v20 = vadd.f32 %v461_v19, %v366_v17  ;;  %v463_v21 = vpop.f32.mrb[1].mxu0 }
 0x17b   : > { %v464_v23 = vadd.f32 %v463_v21, %v370_v18  ;;  %v465_v24 = vpop.f32.mrb[2].mxu0 }
 0x17c   : > { %v509_v26 = vmax.f32 %v462_v20, 0.0  ;;  %v466_v27 = vpop.f32.mrb[3].mxu0 }
 0x17d   : > { %v510_v28 = vmax.f32 %v464_v23, 0.0 }
 0x17e   : > { %v513_v33 = vpack.c.bf16 %v509_v26, %v509_v26 }
 0x17f   : > { %v514_v30 = vpack.c.bf16 %v510_v28, %v510_v28 }
 0x181   : > { %v502_v35 = vpop.f32.mrb[4].mxu0  ;;  %945 = vmatprep.mubr.bf16.mxu1 %v514_v30 }
 0x182   : > { %v503_v36 = vadd.f32 %v502_v35, %v374_v29  ;;  %v504_v37 = vpop.f32.mrb[5].mxu0  ;;  %946 = vmatmul.mubr.bf16.vlgmr.msra.gmra.mrb[0].mxu1 %v513_v33 }
 0x183   : > { %v505_v38 = vadd.f32 %v504_v37, %v378_v31  ;;  %v506_v39 = vpop.f32.mrb[6].mxu0  ;;  %1410 = vmatpush3.bf16.msra.mxu1 %v1638_v32 }
 0x184   : > { %v511_v41 = vmax.f32 %v503_v36, 0.0  ;;  %v507_v42 = vpop.f32.mrb[7].mxu0  ;;  %1411 = vmatprep.subr.bf16.mxu1 %v1639_v34 }
 0x185   : > { %v512_v44 = vmax.f32 %v505_v38, 0.0 }
 0x186   : > { %v515_v47 = vpack.c.bf16 %v511_v41, %v511_v41 }
 0x187   : > { %v516_v45 = vpack.c.bf16 %v512_v44, %v512_v44  ;;  %1412 = vmatpush3.bf16.msra.mxu1 %v1640_v40 }
 0x188   : > { %1413 = vmatprep.subr.bf16.mxu1 %v1641_v43 }
 0x189   : > { %986 = vmatprep.mubr.bf16.mxu0 %v516_v45 }
 0x18a   : > { %987 = vmatmul.mubr.bf16.vlgmr.msra.gmra.mrb[8].mxu0 %v515_v47 }
 0x18b   : > { %1414 = vmatpush3.bf16.msra.mxu1 %v1642_v46 }
 0x18c   : > { %1415 = vmatprep.subr.bf16.mxu1 %v1643_v48 }
 0x18f   : > { %1416 = vmatpush3.bf16.msra.mxu1 %v1644_v49 }
 0x190   : > { %1417 = vmatprep.subr.bf16.mxu1 %v1645_v50 }
 0x193   : > { %1418 = vmatpush3.bf16.msra.mxu1 %v1646_v51 }
 0x194   : > { %1419 = vmatprep.subr.bf16.mxu1 %v1647_v52 }
 0x197   : > { %1420 = vmatpush3.bf16.msra.mxu1 %v1648_v53 }
 0x198   : > { %1421 = vmatprep.subr.bf16.mxu1 %v1649_v54 }
 0x19b   : > { %1422 = vmatpush3.bf16.msra.mxu1 %v1650_v55 }
 0x19c   : > { %1423 = vmatprep.subr.bf16.mxu1 %v1651_v56 }
 0x19f   : > { %1424 = vmatpush3.bf16.msra.mxu1 %v1652_v57 }
 0x255   : > { %v947_v59 = vpop.f32.mrb[0].mxu1 }
 0x256   : > { %v949_v60 = vpop.f32.mrb[1].mxu1  ;;  %v948_v1 = vadd.f32 %v947_v59, %v586_v62 }
 0x257   : > { %v951_v61 = vpop.f32.mrb[2].mxu1  ;;  %v950_v2 = vadd.f32 %v949_v60, %v590_v0 }
 0x258   : > { %v952_v63 = vpop.f32.mrb[3].mxu1 }
 0x25d   : > { %v988_v3 = vpop.f32.mrb[8].mxu0 }
 0x25e   : > { %v989_v4 = vadd.f32 %v988_v3, %v948_v1  ;;  %v990_v5 = vpop.f32.mrb[9].mxu0 }
 0x25f   : > { %v991_v6 = vadd.f32 %v990_v5, %v950_v2  ;;  %v992_v7 = vpop.f32.mrb[10].mxu0 }
 0x260   : > { %v995_v8 = vmax.f32 %v989_v4, 0.0  ;;  %v993_v9 = vpop.f32.mrb[11].mxu0 }
 0x261   : > { %v996_v10 = vmax.f32 %v991_v6, 0.0 }
 0x262   : > { %v997_v12 = vpack.c.bf16 %v995_v8, %v995_v8 }
 0x263   : > { %v998_v11 = vpack.c.bf16 %v996_v10, %v996_v10 }
 0x265   : > { %1166 = vmatprep.mubr.bf16.mxu1 %v998_v11 }
 0x266   : > { %1167 = vmatmul.mubr.bf16.vlgmr.msra.gmra.mrb[4].mxu1 %v997_v12 }
 0x339   : > { %v1425_v13 = vpop.f32.mrb[4].mxu1 }
 0x33a   : > { %v1426_v15 = vpop.f32.mrb[5].mxu1 }
 0x33b   : > { %v1427_v16 = vadd.f32 %v1426_v15, %v1425_v13  ;;  %v1428_v17 = vpop.f32.mrb[6].mxu1 }
 0x33c   : > { %v1429_v18 = vpop.f32.mrb[7].mxu1 }
 0x33d   : > { %v1169_v19 = vadd.f32 %v1427_v16, %v1388_v14 }
 0x33f   : > { %v1174_v20 = vpack.c.bf16 %v1169_v19, %v1169_v19 }
 0x341   : > { %1175 = vst [vmem:[%s349_s12] sm:$0xf] %v1174_v20 }
 0x342   : > { %1808 = shalt.err (!%p1805_p12)
}
 0x343   : > { %s1809_s28 = scalar_lea.hbm %s2179_s13, 64  ;;  %s1813_s10 = scalar_lea.hbm %s2230_s7, 128 }
 0x344   : > { %p1810_p13 = scmp.ne.s32.totalorder %s2179_s13, %s1809_s28  ;;  %p1814_p9 = scmp.lt.u32.totalorder %s2179_s13, %s2230_s7 }
 0x345   : > { %p1815_p4 = scmp.lt.u32.totalorder %s1813_s10, %s1809_s28  ;;  %p1817_p6 = scmp.lt.u32.totalorder %s1809_s28, %s2179_s13 }
 0x346   : > { %p1811_p1 = pnand %p1810_p13, %p2248_p0 }
 0x347   : > { %p1816_p8 = por %p1815_p4, %p1814_p9 }
 0x348   : > { %p1812_p7 = pneg %p1811_p1 }
 0x349   : > { %p1818_p2 = por %p1817_p6, %p1816_p8 }
 0x34b   : > { %p1819_p5 = pnand %p1818_p2, %p1812_p7 }
 0x34d   : > { %1822 = shalt.err (!%p1819_p5)
}
 0x34e   : > { %1453 = dma.vmem_to_hbm [thread:$0]  (%p2248_p0), %s2181_s20, 64, %s2179_s13, %s1177_s11  }
 0x34f PF: > { %s1202_s16 = sand.u32 1, %s1857_s24   ;;  %p2249_p10 = scmp.ne.s32.totalorder %s2241_s15, 0 }
 0x350   : > { %p2250_p11 = scmp.ge.s32.totalorder %s1869_s27, 2  ;;  %s1203_s17 = scalar_lea.sflag [#allocation4], %s1202_s16 }
 0x352   : > { %p1473_p3 = pnand %p2250_p11, %p2249_p10 }
 0x354   : > { %1852 = dma.done.wait (!%p1473_p3), %s1203_s17, 64  }
 0x355   : > { %1854 = vsyncadd (!%p1473_p3), %s1203_s17, 4294967232  ;;  %p22_p12 = scmp.ge.s32.totalorder %s2060_s29, 4   ;;  %s2251_s24 = smov %s1861_s25 }
 0x356   : > { %s2252_s25 = smov %s1865_s26  ;;  %s2253_s26 = smov %s2071_s9 }
 0x357   : > { %s2254_s27 = smov %s2060_s29  ;;  %24 = sbr.rel (!%p22_p12) target bundleno = 7 (0x7), region = 109 }
 0x35e   :  { %1208 = vsyncpa [#allocation3], 1 }
 0x35f   :  { %1210 = vsyncpa [#allocation3 + $0x1], 1 }
 0x360   :  { %1211 = vsyncpa [#allocation6], 1 }
 0x361   :  { %1212 = vsyncpa [#allocation9], 1 }
 0x362   :  { %1213 = vsyncpa [#allocation4], 1 }
 0x363   :  { %1215 = vsyncpa [#allocation4 + $0x1], 1 }

</bundles_post_ra>
